<compile_context>
chip_gen: v7x
topology: tpu7x:2x2x1
jax: 0.10.0
libtpu: 0.0.40
codegen_flags: <defaults>
</compile_context>

<pallas_src>
import functools

import jax
import jax.numpy as jnp
from jax.experimental import pallas as pl
from jax.experimental.pallas import tpu as pltpu

LANE = 128


def _round_up(x, m):
    return (x + m - 1) // m * m


def _vmem_capacity_bytes():
    try:
        return int(pltpu.get_tpu_info().vmem_capacity_bytes)
    except Exception:
        return 64 << 20  # conservative default: v7x per-TensorCore VMEM


def _num_tensorcores():
    """Best-effort megacore detection (v7x has 2 TensorCores per chip)."""
    try:
        info = pltpu.get_tpu_info()
        for name in ("num_cores", "core_count", "num_tensorcores",
                     "tensorcore_count"):
            v = getattr(info, name, None)
            if v:
                return int(v)
    except Exception:
        pass
    try:
        return int(getattr(jax.local_devices()[0], "num_cores", 1)) or 1
    except Exception:
        return 1


def _pick_tile(n_rows, d, x_itemsize, a_itemsize, packing):
    """Pick the sequence tile size by VMEM bytes, not rows."""
    # Double-buffered VMEM footprint per grid step:
    #   2 buffers x (x tile + out tile + attack tile + lane-padded (ts,1) i32 mask)
    bytes_per_row = 2 * (d * (2 * x_itemsize + a_itemsize) + LANE * 4)
    # Cap total data footprint at 32 MiB: fits v7x's 64 MiB VMEM with headroom
    # for Mosaic scratch even if the capacity query over-reports per-chip VMEM.
    budget = min(_vmem_capacity_bytes() // 2, 32 << 20)
    ts = max(packing, (budget // bytes_per_row) // packing * packing)
    ts = min(ts, _round_up(n_rows, packing))

    # Megacore (v7x): keep an even step count (>= 4) so both TensorCores get
    # the same number of bytes on the "parallel" axis. Single-TC chips keep
    # the single biggest tile that fits the budget.
    if _num_tensorcores() >= 2 and n_rows >= 4 * packing:
        steps = pl.cdiv(n_rows, ts)
        steps = max(4, steps + (steps % 2))
        ts = min(ts, _round_up(pl.cdiv(n_rows, steps), packing))
    return ts


def gd_adversary_kernel(mask_ref, attack_ref, x_ref, o_ref, *, n_valid, ts):
    # mask_ref:   (ts, 1)  int32 -- broadcasts over the lane (hidden) dim
    # attack_ref: (ts, D)  attack's native dtype (cast on the VPU below)
    # x_ref:      (ts, D)  x dtype (HBM buffer aliased with o_ref)
    #
    # Row guard: rows >= n_valid (ragged tail past the attack window) must pass
    # x through unchanged; their mask/attack reads may be out-of-bounds garbage.
    rows = pl.program_id(0) * ts + jax.lax.broadcasted_iota(
        jnp.int32, mask_ref.shape, 0)
    m = (mask_ref[...] != 0) & (rows < n_valid)
    o_ref[...] = jnp.where(m, attack_ref[...].astype(o_ref.dtype), x_ref[...])


@functools.partial(jax.jit, donate_argnums=(0,))
def gd_adversary_forward(x, attack, attack_mask):
    """Pallas TPU implementation of GDAdversary.forward (batch-size-1 path).

    x:           (1, S, D)   activations (donated: overwritten in place)
    attack:      (1, S_a, D) learned attack embedding (any float dtype)
    attack_mask: (1, S_a)    bool
    """
    B, S, D = x.shape
    assert B == 1, "kernel implements the single-batch forward path"
    # TODO(synk): the batch>1 branch of the PyTorch forward scatters rows via
    # host-side self.batches['padd_prompt_mask'] metadata; not implemented here.

    S_a = attack.shape[1]

    # Early-return branch of the PyTorch forward:
    #   if x.shape[1] == 1 and attack.shape[1] != 1: return x
    if S == 1 and S_a != 1:
        return x

    dtype = x.dtype
    x_item = jnp.dtype(dtype).itemsize
    a_item = jnp.dtype(attack.dtype).itemsize
    packing = max(8, 32 // x_item, 32 // a_item)  # sublane packing of both dtypes

    # Only the first n rows of x may be overwritten. The grid covers only those
    # rows; tail rows (S > S_a case) are never DMA'd and retain x's values
    # through the input/output alias.
    n = min(S, S_a)
    ts = _pick_tile(n, D, x_item, a_item, packing)
    grid = pl.cdiv(n, ts)

    # Cheap (S_a,1) int32 mask column; attack/x are passed without any copy,
    # cast, pad or slice (squeezing the leading batch dim is a free reshape).
    mask2 = attack_mask[0].astype(jnp.int32)[:, None]   # (S_a, 1)
    attack2 = attack[0]                                  # (S_a, D) native dtype
    x2 = x[0]                                            # (S,  D)

    footprint = 2 * ts * (D * (2 * x_item + a_item) + LANE * 4)
    vmem_cap = _vmem_capacity_bytes()
    vmem_limit = int(min(max(footprint + (4 << 20), 16 << 20),
                         max(vmem_cap - (4 << 20), 16 << 20)))

    kernel = functools.partial(gd_adversary_kernel, n_valid=n, ts=ts)
    out = pl.pallas_call(
        kernel,
        out_shape=jax.ShapeDtypeStruct((S, D), dtype),
        grid=(grid,),
        in_specs=[
            pl.BlockSpec((ts, 1), lambda i: (i, 0)),   # mask (i32 column)
            pl.BlockSpec((ts, D), lambda i: (i, 0)),   # attack (native dtype)
            pl.BlockSpec((ts, D), lambda i: (i, 0)),   # x (aliased with out)
        ],
        out_specs=pl.BlockSpec((ts, D), lambda i: (i, 0)),
        # In-place masked overwrite: alias x (input index 2) to the output.
        # Blocks the grid never touches keep x's values.
        input_output_aliases={2: 0},
        compiler_params=pltpu.CompilerParams(
            dimension_semantics=("parallel",),
            vmem_limit_bytes=vmem_limit,
        ),
    )(mask2, attack2, x2)

    # TODO(synk): for sparse/contiguous adversarial spans, prefetch a per-tile
    # occupancy table (PrefetchScalarGridSpec(num_scalar_prefetch=1)), skip the
    # attack DMA / select for all-False tiles with pl.when, and shrink the grid
    # to the span when it is statically known.

    return out[None]                                     # (1, S, D), free reshape


def init_gd_adversary_params(key, *, seq_len, dim, vocab):
    """Deterministic stand-in for GDAdversary.__init__ (no file loads).

    attack is initialized by gathering random rows of the embedding space,
    exactly as `embedding_space[random_indices]` in the module.
    """
    k_emb, k_idx = jax.random.split(key)
    embedding_space = jax.random.normal(k_emb, (vocab, dim), dtype=jnp.float32)
    random_indices = jax.random.randint(k_idx, (1, seq_len), 0, vocab)
    attack = embedding_space[random_indices]                  # (1, S, D)
    # TODO(synk): clip_attack() picks a *random* one of the 3 nearest embeddings;
    # since attack rows already come from embedding_space the nearest row is
    # itself, so keeping attack as-is is the deterministic fixed point.
    return attack, embedding_space


if __name__ == "__main__":
    key = jax.random.PRNGKey(0)
    (k_param, k_x, k_mask, k_a2, k_x2, k_mask2,
     k_a3, k_x3, k_mask3) = jax.random.split(key, 9)

    # --- Case 1: f32, x length == attack length (D=32 exercises a full-dim,
    # non-128-multiple lane block with no wrapper padding).
    S, D, V = 16, 32, 64
    attack, embedding_space = init_gd_adversary_params(
        k_param, seq_len=S, dim=D, vocab=V)
    attack_mask = jax.random.uniform(k_mask, (1, S)) < 0.5
    x = jax.random.normal(k_x, (1, S, D), dtype=jnp.float32)
    ref = jax.block_until_ready(
        jnp.where(attack_mask[:, :, None], attack.astype(x.dtype), x))
    # x is donated (in-place overwrite); pass a copy so the original stays valid.
    out = jax.block_until_ready(gd_adversary_forward(x.copy(), attack, attack_mask))
    assert out.shape == x.shape and out.dtype == x.dtype
    assert jnp.allclose(out, ref), "case 1: mismatch vs reference masked overwrite"

    # --- Case 2: bf16 activations shorter than the attack (module slicing path),
    # attack kept f32 and cast inside the kernel.
    S2, Sa2, D2 = 40, 64, 256
    attack2 = jax.random.normal(k_a2, (1, Sa2, D2), dtype=jnp.float32)
    attack_mask2 = jax.random.uniform(k_mask2, (1, Sa2)) < 0.3
    x2 = jax.random.normal(k_x2, (1, S2, D2), dtype=jnp.bfloat16)
    ref2 = jax.block_until_ready(
        jnp.where(attack_mask2[:, :S2, None],
                  attack2[:, :S2, :].astype(x2.dtype), x2))
    out2 = jax.block_until_ready(gd_adversary_forward(x2.copy(), attack2, attack_mask2))
    assert out2.shape == x2.shape and out2.dtype == x2.dtype
    assert jnp.allclose(out2.astype(jnp.float32), ref2.astype(jnp.float32)), \
        "case 2: mismatch vs reference masked overwrite"

    # --- Case 3: activations longer than the attack window: tail rows must be
    # left untouched (grid only covers the attack window; alias keeps x there).
    S3, Sa3, D3 = 24, 8, 128
    attack3 = jax.random.normal(k_a3, (1, Sa3, D3), dtype=jnp.float32)
    attack_mask3 = jax.random.uniform(k_mask3, (1, Sa3)) < 0.5
    x3 = jax.random.normal(k_x3, (1, S3, D3), dtype=jnp.bfloat16)
    ref3 = x3.at[:, :Sa3, :].set(
        jnp.where(attack_mask3[:, :, None], attack3.astype(x3.dtype), x3[:, :Sa3, :]))
    ref3 = jax.block_until_ready(ref3)
    out3 = jax.block_until_ready(gd_adversary_forward(x3.copy(), attack3, attack_mask3))
    assert out3.shape == x3.shape and out3.dtype == x3.dtype
    assert jnp.allclose(out3.astype(jnp.float32), ref3.astype(jnp.float32)), \
        "case 3: mismatch (tail rows of x must be preserved through the alias)"

    print("KERNEL_OK")
</pallas_src>

<mosaic_0001>
module attributes {stable_mosaic.version = 11 : i64} {
  func.func @gd_adversary_kernel(%arg0: i32, %arg1: memref<16x1xi32, #tpu.memory_space<vmem>>, %arg2: memref<16x32xf32, #tpu.memory_space<vmem>>, %arg3: memref<16x32xf32, #tpu.memory_space<vmem>>, %arg4: memref<16x32xf32, #tpu.memory_space<vmem>>) attributes {dimension_semantics = [#tpu.dimension_semantics<parallel>], iteration_bounds = array<i64: 1>, scalar_prefetch = 0 : i64, scratch_operands = 0 : i64, tpu.core_type = #tpu.core_type<tc>, window_params = [{transform_indices = @transform_0, window_bounds = array<i64: 16, 1>}, {transform_indices = @transform_1, window_bounds = array<i64: 16, 32>}, {transform_indices = @transform_2, window_bounds = array<i64: 16, 32>}, {transform_indices = @transform_3, window_bounds = array<i64: 16, 32>}]} {
    %c16_i32 = arith.constant 16 : i32
    %0 = arith.muli %arg0, %c16_i32 : i32
    %1 = tpu.iota {dimensions = array<i32: 0>} : vector<16x1xi32>
    %2 = vector.broadcast %0 : i32 to vector<16x1xi32>
    %3 = arith.addi %2, %1 : vector<16x1xi32>
    %c0 = arith.constant 0 : index
    %c0_0 = arith.constant 0 : index
    %4 = vector.load %arg1[%c0, %c0_0] : memref<16x1xi32, #tpu.memory_space<vmem>>, vector<16x1xi32>
    %c0_i32 = arith.constant 0 : i32
    %5 = vector.broadcast %c0_i32 : i32 to vector<16x1xi32>
    %6 = arith.cmpi ne, %4, %5 : vector<16x1xi32>
    %c16_i32_1 = arith.constant 16 : i32
    %7 = vector.broadcast %c16_i32_1 : i32 to vector<16x1xi32>
    %8 = arith.cmpi slt, %3, %7 : vector<16x1xi32>
    %9 = arith.andi %6, %8 : vector<16x1xi1>
    %c0_2 = arith.constant 0 : index
    %c0_3 = arith.constant 0 : index
    %10 = vector.load %arg2[%c0_2, %c0_3] : memref<16x32xf32, #tpu.memory_space<vmem>>, vector<16x32xf32>
    %c0_4 = arith.constant 0 : index
    %c0_5 = arith.constant 0 : index
    %11 = vector.load %arg3[%c0_4, %c0_5] : memref<16x32xf32, #tpu.memory_space<vmem>>, vector<16x32xf32>
    %12 = vector.shape_cast %9 : vector<16x1xi1> to vector<16x1xi1>
    %13 = vector.broadcast %12 : vector<16x1xi1> to vector<16x32xi1>
    %14 = arith.select %13, %10, %11 : vector<16x32xi1>, vector<16x32xf32>
    %c0_6 = arith.constant 0 : index
    %c0_7 = arith.constant 0 : index
    %15 = vector.load %arg4[%c0_6, %c0_7] : memref<16x32xf32, #tpu.memory_space<vmem>>, vector<16x32xf32>
    tpu.vector_store %arg4[%c0_6, %c0_7], %14 {strides = array<i32>} : memref<16x32xf32, #tpu.memory_space<vmem>>, vector<16x32xf32>,
    return
  }
  func.func @transform_0(%arg0: i32) -> (i32, i32) {
    %c0_i32 = arith.constant 0 : i32
    %c0_i32_0 = arith.constant 0 : i32
    return %arg0, %c0_i32 : i32, i32
  }
  func.func @transform_1(%arg0: i32) -> (i32, i32) {
    %c0_i32 = arith.constant 0 : i32
    %c0_i32_0 = arith.constant 0 : i32
    return %arg0, %c0_i32 : i32, i32
  }
  func.func @transform_2(%arg0: i32) -> (i32, i32) {
    %c0_i32 = arith.constant 0 : i32
    %c0_i32_0 = arith.constant 0 : i32
    return %arg0, %c0_i32 : i32, i32
  }
  func.func @transform_3(%arg0: i32) -> (i32, i32) {
    %c0_i32 = arith.constant 0 : i32
    %c0_i32_0 = arith.constant 0 : i32
    return %arg0, %c0_i32 : i32, i32
  }
}

</mosaic_0001>

<bundles_post_ra>
// kernel: gd_adversary_forward.1
= control target key start
LH: loop header
LB: loop body
LE: loop exit
PB: predicated region body
PF: predicated region fallthrough
CT: control target
= control target key end

     0   :  { %v54_v0 = vmov 0   ;;  %vm45_vm2 = vcmask 261120   ;;  %s99_s0 = inlined_call_operand.vmem [shape: s32[16,1], index: 0, kind: input, shape index: {}]   ;;  %s100_s1 = inlined_call_operand.vmem [shape: f32[16,32], index: 1, kind: input, shape index: {}]   ;;  %s101_s2 = inlined_call_operand.vmem [shape: f32[16,32], index: 2, kind: input, shape index: {}, may-alias: {2,3}]   ;;  %s102_s3 = inlined_call_operand.vmem [shape: f32[16,32], index: 3, kind: output, shape index: {}, may-alias: {2,3}]  }
   0x1   :  { %53 = vset.pattern.permute.xlu0 %v54_v0  ;;  %v21_v1 = vld [vmem:[%s99_s0] sm:$0xff]  ;;  %v22_v2 = vld [vmem:[%s99_s0 + $0x8] sm:$0xff] }
   0x2   :  { %vm23_vm0 = vcmp.ne.s32.totalorder %v21_v1, 0  ;;  %vm24_vm1 = vcmp.ne.s32.totalorder %v22_v2, 0  ;;  %v29_v5 = vld [vmem:[%s100_s1] sm:$0xff]  ;;  %v30_v9 = vld [vmem:[%s100_s1 + $0x8] sm:$0xff] }
   0x3   :  { %v33_v3 = vsel %vm23_vm0, 1, %v54_v0  ;;  %v34_v4 = vsel %vm24_vm1, 1, %v54_v0  ;;  %v31_v6 = vld [vmem:[%s101_s2] sm:$0xff] }
   0x4   :  { %36 = vperm.xlu0 %53, %v33_v3  }
   0x8   :  { %39 = vperm.xlu0 %53, %v34_v4  }
  0x83   :  { %v37_v7 = vpop.permute.xlu0 %36 }
  0x84   :  { %vm41_vm3 = vcmp.eq.s32.totalorder %v37_v7, 1 }
  0x85   :  { %v43_v8 = vsel %vm41_vm3, %v29_v5, %v31_v6 }
  0x86   :  { %46 = vst.msk [vmem:[%s102_s3] sm:$0xff] %vm45_vm2, %v43_v8 }
  0x87   :  { %v40_v11 = vpop.permute.xlu0 %39 }
  0x88   :  { %vm42_vm4 = vcmp.eq.s32.totalorder %v40_v11, 1 }
  0x8d   :  { %v32_v10 = vld [vmem:[%s101_s2 + $0x8] sm:$0xff] }
  0x8e   :  { %v44_v12 = vsel %vm42_vm4, %v30_v9, %v32_v10 }
  0x8f   :  { %47 = vst.msk [vmem:[%s102_s3 + $0x8] sm:$0xff] %vm45_vm2, %v44_v12 }

</bundles_post_ra>
